<compile_context>
chip_gen: v7x
topology: tpu7x:2x2x1
jax: 0.10.0
libtpu: 0.0.40
codegen_flags: <defaults>
</compile_context>

<pallas_src>
import functools

import jax
import jax.numpy as jnp
from jax import lax
from jax.experimental import pallas as pl
from jax.experimental.pallas import tpu as pltpu

_LN_EPS = 1e-5
_VMEM_LIMIT_BYTES = 48 * 1024 * 1024  # safe on v5e/v6e/v7x; raise for large shapes


def _ln_inproj_mlp_kernel(mlp_hidden, dim,
                          x_ref, g_ref, bta_ref, w_in_ref, b_in_ref,
                          w_mlp_ref, b_out_ref,
                          xpart_ref, q_ref, k_ref, v_ref):
    # x_ref: (1, T, C) f32 ; g/bta: (1, C) f32 ; w_in: (C, mh+3C) bf16 ;
    # b_in: (1, mh+3C) f32 (q columns pre-scaled) ; w_mlp: (mh, C) bf16 ;
    # b_out: (1, C) f32 = b_attn_out + b_mlp_out.
    x = x_ref[0].astype(jnp.float32)                               # (T, C)
    mu = jnp.mean(x, axis=-1, keepdims=True)
    xc = x - mu
    var = jnp.mean(xc * xc, axis=-1, keepdims=True)
    xn = xc * lax.rsqrt(var + _LN_EPS)
    xn = xn * g_ref[...] + bta_ref[...]                            # affine LN, f32

    # Fused in_proj: bf16 MXU operands, f32 accumulation. Attention scale already
    # folded into the q columns of w_in / b_in by the wrapper.
    y = jnp.dot(xn.astype(jnp.bfloat16), w_in_ref[...],
                preferred_element_type=jnp.float32) + b_in_ref[...]    # (T, mh+3C)

    q_ref[0] = y[:, mlp_hidden + 0 * dim: mlp_hidden + 1 * dim].astype(q_ref.dtype)
    k_ref[0] = y[:, mlp_hidden + 1 * dim: mlp_hidden + 2 * dim].astype(k_ref.dtype)
    v_ref[0] = y[:, mlp_hidden + 2 * dim: mlp_hidden + 3 * dim].astype(v_ref.dtype)

    # MLP branch fused here: x_mlp never round-trips through HBM.
    # TODO(synk): PyTorch nn.GELU() defaults to exact erf; erf has no guaranteed
    # Mosaic lowering, so the tanh approximation is used (|dev| ~ 1e-3).
    xm = y[:, :mlp_hidden]
    c0 = 0.7978845608028654                                        # sqrt(2/pi)
    gm = 0.5 * xm * (1.0 + jnp.tanh(c0 * (xm + 0.044715 * xm * xm * xm)))
    x_mlp = jnp.dot(gm.astype(jnp.bfloat16), w_mlp_ref[...],
                    preferred_element_type=jnp.float32) + b_out_ref[...]

    # Partial residual: x + mlp_out + (b_attn_out + b_mlp_out), f32.
    xpart_ref[0] = (x + x_mlp).astype(xpart_ref.dtype)


def _attn_kernel(num_heads, head_dim,
                 xpart_ref, q_ref, k_ref, v_ref, w_attn_ref, o_ref):
    # q: (TQ, C) bf16 (scale folded in), k/v: (N, C) bf16, w_attn: (C, C) bf16.
    q = q_ref[0]
    k = k_ref[0]
    v = v_ref[0]

    # TODO(synk): for many heads (>=16) switch to lax.fori_loop + a VMEM head
    # scratch (pl.ds offsets) to bound live ranges; static unroll kept here since
    # dynamic lane-offset slices are the riskier lowering path.
    parts = []
    for h in range(num_heads):                 # static offsets
        lo = h * head_dim
        qh = q[:, lo:lo + head_dim]
        kh = k[:, lo:lo + head_dim]
        vh = v[:, lo:lo + head_dim]

        # q @ k^T via dot_general contracting head_dim on both sides (no transpose).
        s = lax.dot_general(qh, kh, (((1,), (1,)), ((), ())),
                            preferred_element_type=jnp.float32)   # (TQ, N) f32
        s = s - jnp.max(s, axis=-1, keepdims=True)
        p = jnp.exp(s)
        # Softmax reciprocal folded into the small (TQ, head_dim) PV output instead
        # of the (TQ, N) probability tile.
        inv_l = pl.reciprocal(jnp.sum(p, axis=-1, keepdims=True), approx=True)
        oh = jnp.dot(p.astype(jnp.bfloat16), vh,
                     preferred_element_type=jnp.float32) * inv_l   # (TQ, hd) f32
        parts.append(oh.astype(jnp.bfloat16))

    # Lane-dense concat of head outputs, then ONE full-C contraction on the MXU.
    heads = parts[0] if num_heads == 1 else jnp.concatenate(parts, axis=-1)
    x_attn = jnp.dot(heads, w_attn_ref[...],
                     preferred_element_type=jnp.float32)           # (TQ, C) f32

    # xpart already carries x + mlp_out + biases (f32).
    o_ref[0] = (xpart_ref[0] + x_attn).astype(o_ref.dtype)


def parallel_scaling_block_forward(x, ln_gamma, ln_beta, w_in, mlp_bias,
                                   w_attn_out, b_attn_out, w_mlp_out, b_mlp_out,
                                   *, num_heads, seq_tile=None):
    """x: (B, N, C) f32. Weights are the module's Linear weights pre-transposed to
    (in_features, out_features): w_in (C, mlp_hidden+3C) with output columns ordered
    [x_mlp | q | k | v], w_attn_out (C, C), w_mlp_out (mlp_hidden, C)."""
    B, N, C = x.shape
    assert C % num_heads == 0
    head_dim = C // num_heads
    scale = head_dim ** -0.5
    mlp_hidden = mlp_bias.shape[0]
    in_dim = mlp_hidden + 3 * C
    assert w_in.shape == (C, in_dim)
    assert w_attn_out.shape == (C, C)
    assert w_mlp_out.shape == (mlp_hidden, C)

    if seq_tile is None:
        # Sweep upward (384-512) on v5e/v6e with a higher vmem limit; cap at
        # 128-256 on v7x (64 MiB VMEM).
        seq_tile = N if N <= 256 else 256
    assert N % seq_tile == 0 and (seq_tile == N or seq_tile % 8 == 0)

    # in_proj bias exactly as the module does it: cat(zero qkv_bias, trainable
    # mlp_bias) applied to the [x_mlp | q | k | v] output columns (timm's literal
    # layout: zeros land on the first 3C columns, mlp_bias on the last mlp_hidden).
    b_in = jnp.concatenate([jnp.zeros((3 * C,), jnp.float32),
                            mlp_bias.astype(jnp.float32)])
    # Fold the attention scale (head_dim ** -0.5) into the q columns of the in_proj
    # weight AND its bias slice once (the module scales q after the bias is added).
    col_scale = jnp.concatenate([jnp.ones((mlp_hidden,), jnp.float32),
                                 jnp.full((C,), scale, jnp.float32),
                                 jnp.ones((2 * C,), jnp.float32)])
    w_in_s = (w_in.astype(jnp.float32) * col_scale[None, :]).astype(jnp.bfloat16)
    b_in_s = (b_in * col_scale).reshape(1, in_dim)

    gamma2 = ln_gamma.reshape(1, C).astype(jnp.float32)
    beta2 = ln_beta.reshape(1, C).astype(jnp.float32)
    # Both output-projection biases pre-summed and applied once in kernel 1.
    b_out = (b_attn_out.astype(jnp.float32)
             + b_mlp_out.astype(jnp.float32)).reshape(1, C)
    w_mlp_bf = w_mlp_out.astype(jnp.bfloat16)
    w_attn_bf = w_attn_out.astype(jnp.bfloat16)   # bf16 in the wrapper, not per step

    cparams = pltpu.CompilerParams(
        dimension_semantics=("parallel", "parallel"),
        vmem_limit_bytes=_VMEM_LIMIT_BYTES)

    # ---- kernel 1: LayerNorm + in_proj + GELU-MLP -> partial residual + q/k/v ----
    k1 = functools.partial(_ln_inproj_mlp_kernel, mlp_hidden, C)
    xpart, q, k, v = pl.pallas_call(
        k1,
        out_shape=(
            jax.ShapeDtypeStruct((B, N, C), jnp.float32),    # x + mlp_out + biases
            jax.ShapeDtypeStruct((B, N, C), jnp.bfloat16),   # q (pre-scaled)
            jax.ShapeDtypeStruct((B, N, C), jnp.bfloat16),   # k
            jax.ShapeDtypeStruct((B, N, C), jnp.bfloat16),   # v
        ),
        grid_spec=pltpu.PrefetchScalarGridSpec(
            num_scalar_prefetch=0,
            grid=(B, N // seq_tile),
            in_specs=[
                pl.BlockSpec((1, seq_tile, C), lambda b, i: (b, i, 0)),   # x
                pl.BlockSpec((1, C), lambda b, i: (0, 0)),                # gamma
                pl.BlockSpec((1, C), lambda b, i: (0, 0)),                # beta
                pl.BlockSpec((C, in_dim), lambda b, i: (0, 0)),           # w_in (bf16)
                pl.BlockSpec((1, in_dim), lambda b, i: (0, 0)),           # b_in
                pl.BlockSpec((mlp_hidden, C), lambda b, i: (0, 0)),       # w_mlp (bf16)
                pl.BlockSpec((1, C), lambda b, i: (0, 0)),                # b_out
            ],
            out_specs=(
                pl.BlockSpec((1, seq_tile, C), lambda b, i: (b, i, 0)),
                pl.BlockSpec((1, seq_tile, C), lambda b, i: (b, i, 0)),
                pl.BlockSpec((1, seq_tile, C), lambda b, i: (b, i, 0)),
                pl.BlockSpec((1, seq_tile, C), lambda b, i: (b, i, 0)),
            ),
        ),
        compiler_params=cparams,
    )(x, gamma2, beta2, w_in_s, b_in_s, w_mlp_bf, b_out)

    # ---- kernel 2: attention + single out-projection + residual ----
    k2 = functools.partial(_attn_kernel, num_heads, head_dim)
    out = pl.pallas_call(
        k2,
        out_shape=jax.ShapeDtypeStruct((B, N, C), x.dtype),
        grid_spec=pltpu.PrefetchScalarGridSpec(
            num_scalar_prefetch=0,
            grid=(B, N // seq_tile),
            in_specs=[
                pl.BlockSpec((1, seq_tile, C), lambda b, i: (b, i, 0)),   # partial residual
                pl.BlockSpec((1, seq_tile, C), lambda b, i: (b, i, 0)),   # q
                pl.BlockSpec((1, N, C), lambda b, i: (b, 0, 0)),          # k (full seq)
                pl.BlockSpec((1, N, C), lambda b, i: (b, 0, 0)),          # v (full seq)
                pl.BlockSpec((C, C), lambda b, i: (0, 0)),                # w_attn_out bf16
            ],
            out_specs=pl.BlockSpec((1, seq_tile, C), lambda b, i: (b, i, 0)),
        ),
        compiler_params=cparams,
    )(xpart, q, k, v, w_attn_bf)
    return out


def parallel_scaling_block_reference(x, ln_gamma, ln_beta, w_in, mlp_bias,
                                     w_attn_out, b_attn_out, w_mlp_out, b_mlp_out,
                                     *, num_heads):
    """Plain-JAX f32 reference mirroring the PyTorch forward (eval, defaults)."""
    B, N, C = x.shape
    hd = C // num_heads
    scale = hd ** -0.5
    mh = mlp_bias.shape[0]
    mu = jnp.mean(x, axis=-1, keepdims=True)
    var = jnp.mean((x - mu) ** 2, axis=-1, keepdims=True)
    y = (x - mu) / jnp.sqrt(var + _LN_EPS) * ln_gamma + ln_beta
    b_in = jnp.concatenate([jnp.zeros((3 * C,), x.dtype), mlp_bias])
    y = y @ w_in + b_in
    x_mlp = y[..., :mh]
    q = y[..., mh:mh + C].reshape(B, N, num_heads, hd).transpose(0, 2, 1, 3)
    k = y[..., mh + C:mh + 2 * C].reshape(B, N, num_heads, hd).transpose(0, 2, 1, 3)
    v = y[..., mh + 2 * C:].reshape(B, N, num_heads, hd).transpose(0, 2, 1, 3)
    attn = jax.nn.softmax((q * scale) @ jnp.swapaxes(k, -2, -1), axis=-1)
    x_attn = (attn @ v).transpose(0, 2, 1, 3).reshape(B, N, C)
    x_attn = x_attn @ w_attn_out + b_attn_out
    x_mlp = jax.nn.gelu(x_mlp, approximate=False) @ w_mlp_out + b_mlp_out
    return x + x_attn + x_mlp


if __name__ == "__main__":
    # Small shapes consistent with the module: B=2, N=8 tokens, C=32 dim, 4 heads,
    # mlp_ratio=4 -> mlp_hidden=128, in_proj_out_dim=224.
    B, N, C = 2, 8, 32
    num_heads = 4
    mlp_hidden = int(4.0 * C)
    in_dim = mlp_hidden + 3 * C

    key = jax.random.PRNGKey(0)
    ks = jax.random.split(key, 9)
    x = jax.random.normal(ks[0], (B, N, C), dtype=jnp.float32)
    ln_gamma = 1.0 + 0.1 * jax.random.normal(ks[1], (C,), dtype=jnp.float32)
    ln_beta = 0.05 * jax.random.normal(ks[2], (C,), dtype=jnp.float32)
    w_in = jax.random.normal(ks[3], (C, in_dim), dtype=jnp.float32) * (C ** -0.5)
    mlp_bias = 0.05 * jax.random.normal(ks[4], (mlp_hidden,), dtype=jnp.float32)
    w_attn_out = jax.random.normal(ks[5], (C, C), dtype=jnp.float32) * (C ** -0.5)
    b_attn_out = 0.05 * jax.random.normal(ks[6], (C,), dtype=jnp.float32)
    w_mlp_out = jax.random.normal(ks[7], (mlp_hidden, C), dtype=jnp.float32) * (mlp_hidden ** -0.5)
    b_mlp_out = 0.05 * jax.random.normal(ks[8], (C,), dtype=jnp.float32)

    out = parallel_scaling_block_forward(
        x, ln_gamma, ln_beta, w_in, mlp_bias,
        w_attn_out, b_attn_out, w_mlp_out, b_mlp_out, num_heads=num_heads)
    out = jax.block_until_ready(out)

    ref = parallel_scaling_block_reference(
        x, ln_gamma, ln_beta, w_in, mlp_bias,
        w_attn_out, b_attn_out, w_mlp_out, b_mlp_out, num_heads=num_heads)

    assert out.shape == (B, N, C)
    # Mixed-precision tolerance: bf16 MXU operands / bf16 intermediate streams,
    # approx reciprocal and tanh-GELU in the kernel vs a pure-f32 exact reference.
    assert jnp.allclose(out, ref, atol=5e-2, rtol=5e-2), (
        "mismatch vs reference, max abs diff = "
        f"{float(jnp.max(jnp.abs(out - ref)))}")
    print("KERNEL_OK")
</pallas_src>

<mosaic_0001>
module attributes {stable_mosaic.version = 11 : i64} {
  func.func @_ln_inproj_mlp_kernel(%arg0: i32, %arg1: i32, %arg2: memref<1x8x32xf32, #tpu.memory_space<vmem>>, %arg3: memref<1x32xf32, #tpu.memory_space<vmem>>, %arg4: memref<1x32xf32, #tpu.memory_space<vmem>>, %arg5: memref<32x224xbf16, #tpu.memory_space<vmem>>, %arg6: memref<1x224xf32, #tpu.memory_space<vmem>>, %arg7: memref<128x32xbf16, #tpu.memory_space<vmem>>, %arg8: memref<1x32xf32, #tpu.memory_space<vmem>>, %arg9: memref<1x8x32xf32, #tpu.memory_space<vmem>>, %arg10: memref<1x8x32xbf16, #tpu.memory_space<vmem>>, %arg11: memref<1x8x32xbf16, #tpu.memory_space<vmem>>, %arg12: memref<1x8x32xbf16, #tpu.memory_space<vmem>>) attributes {dimension_semantics = [#tpu.dimension_semantics<parallel>, #tpu.dimension_semantics<parallel>], iteration_bounds = array<i64: 2, 1>, scalar_prefetch = 0 : i64, scratch_operands = 0 : i64, tpu.core_type = #tpu.core_type<tc>, window_params = [{transform_indices = @transform_0, window_bounds = array<i64: 1, 8, 32>}, {pipeline_mode = #tpu.pipeline_mode<synchronous>, transform_indices = @transform_1, window_bounds = array<i64: 1, 32>}, {pipeline_mode = #tpu.pipeline_mode<synchronous>, transform_indices = @transform_2, window_bounds = array<i64: 1, 32>}, {pipeline_mode = #tpu.pipeline_mode<synchronous>, transform_indices = @transform_3, window_bounds = array<i64: 32, 224>}, {pipeline_mode = #tpu.pipeline_mode<synchronous>, transform_indices = @transform_4, window_bounds = array<i64: 1, 224>}, {pipeline_mode = #tpu.pipeline_mode<synchronous>, transform_indices = @transform_5, window_bounds = array<i64: 128, 32>}, {pipeline_mode = #tpu.pipeline_mode<synchronous>, transform_indices = @transform_6, window_bounds = array<i64: 1, 32>}, {transform_indices = @transform_7, window_bounds = array<i64: 1, 8, 32>}, {transform_indices = @transform_8, window_bounds = array<i64: 1, 8, 32>}, {transform_indices = @transform_9, window_bounds = array<i64: 1, 8, 32>}, {transform_indices = @transform_10, window_bounds = array<i64: 1, 8, 32>}]} {
    %c0 = arith.constant 0 : index
    %c0_0 = arith.constant 0 : index
    %c0_1 = arith.constant 0 : index
    %0 = vector.load %arg2[%c0, %c0_0, %c0_1] : memref<1x8x32xf32, #tpu.memory_space<vmem>>, vector<1x8x32xf32>
    %1 = vector.shape_cast %0 : vector<1x8x32xf32> to vector<8x32xf32>
    %cst = arith.constant dense<0.000000e+00> : vector<8xf32>
    %2 = vector.multi_reduction <add>, %1, %cst [1] : vector<8x32xf32> to vector<8xf32>
    %3 = vector.shape_cast %2 : vector<8xf32> to vector<8x1xf32>
    %cst_2 = arith.constant 3.200000e+01 : f32
    %4 = vector.broadcast %cst_2 : f32 to vector<8x1xf32>
    %5 = arith.divf %3, %4 : vector<8x1xf32>
    %6 = vector.broadcast %5 : vector<8x1xf32> to vector<8x32xf32>
    %7 = arith.subf %1, %6 : vector<8x32xf32>
    %8 = arith.mulf %7, %7 : vector<8x32xf32>
    %cst_3 = arith.constant dense<0.000000e+00> : vector<8xf32>
    %9 = vector.multi_reduction <add>, %8, %cst_3 [1] : vector<8x32xf32> to vector<8xf32>
    %10 = vector.shape_cast %9 : vector<8xf32> to vector<8x1xf32>
    %cst_4 = arith.constant 3.200000e+01 : f32
    %11 = vector.broadcast %cst_4 : f32 to vector<8x1xf32>
    %12 = arith.divf %10, %11 : vector<8x1xf32>
    %cst_5 = arith.constant 9.99999974E-6 : f32
    %13 = vector.broadcast %cst_5 : f32 to vector<8x1xf32>
    %14 = arith.addf %12, %13 : vector<8x1xf32>
    %15 = math.rsqrt %14 : vector<8x1xf32>
    %16 = vector.broadcast %15 : vector<8x1xf32> to vector<8x32xf32>
    %17 = arith.mulf %7, %16 : vector<8x32xf32>
    %c0_6 = arith.constant 0 : index
    %c0_7 = arith.constant 0 : index
    %18 = vector.load %arg3[%c0_6, %c0_7] : memref<1x32xf32, #tpu.memory_space<vmem>>, vector<1x32xf32>
    %19 = vector.broadcast %18 : vector<1x32xf32> to vector<8x32xf32>
    %20 = arith.mulf %17, %19 : vector<8x32xf32>
    %c0_8 = arith.constant 0 : index
    %c0_9 = arith.constant 0 : index
    %21 = vector.load %arg4[%c0_8, %c0_9] : memref<1x32xf32, #tpu.memory_space<vmem>>, vector<1x32xf32>
    %22 = vector.broadcast %21 : vector<1x32xf32> to vector<8x32xf32>
    %23 = arith.addf %20, %22 : vector<8x32xf32>
    %24 = arith.truncf %23 : vector<8x32xf32> to vector<8x32xbf16>
    %c0_10 = arith.constant 0 : index
    %c0_11 = arith.constant 0 : index
    %25 = vector.load %arg5[%c0_10, %c0_11] : memref<32x224xbf16, #tpu.memory_space<vmem>>, vector<32x224xbf16>
    %cst_12 = arith.constant dense<0.000000e+00> : vector<8x224xf32>
    %26 = tpu.matmul %24, %25, %cst_12 {dimension_numbers = #tpu.dot_dimension_numbers<[1], [0], [0], [1], [0, 0, 1, 1], [], []>} : vector<8x32xbf16>, vector<32x224xbf16>, vector<8x224xf32> -> vector<8x224xf32>
    %c0_13 = arith.constant 0 : index
    %c0_14 = arith.constant 0 : index
    %27 = vector.load %arg6[%c0_13, %c0_14] : memref<1x224xf32, #tpu.memory_space<vmem>>, vector<1x224xf32>
    %28 = vector.broadcast %27 : vector<1x224xf32> to vector<8x224xf32>
    %29 = arith.addf %26, %28 : vector<8x224xf32>
    %30 = vector.extract_strided_slice %29 {offsets = [0, 128], sizes = [8, 32], strides = [1, 1]} : vector<8x224xf32> to vector<8x32xf32>
    %31 = arith.truncf %30 : vector<8x32xf32> to vector<8x32xbf16>
    %c0_15 = arith.constant 0 : index
    %c0_16 = arith.constant 0 : index
    %c0_17 = arith.constant 0 : index
    %32 = vector.load %arg10[%c0_15, %c0_16, %c0_17] : memref<1x8x32xbf16, #tpu.memory_space<vmem>>, vector<1x8x32xbf16>
    %33 = vector.shape_cast %32 : vector<1x8x32xbf16> to vector<8x32xbf16>
    %34 = vector.shape_cast %31 : vector<8x32xbf16> to vector<1x8x32xbf16>
    tpu.vector_store %arg10[%c0_15, %c0_16, %c0_17], %34 {strides = array<i32>} : memref<1x8x32xbf16, #tpu.memory_space<vmem>>, vector<1x8x32xbf16>,
    %35 = vector.extract_strided_slice %29 {offsets = [0, 160], sizes = [8, 32], strides = [1, 1]} : vector<8x224xf32> to vector<8x32xf32>
    %36 = arith.truncf %35 : vector<8x32xf32> to vector<8x32xbf16>
    %c0_18 = arith.constant 0 : index
    %c0_19 = arith.constant 0 : index
    %c0_20 = arith.constant 0 : index
    %37 = vector.load %arg11[%c0_18, %c0_19, %c0_20] : memref<1x8x32xbf16, #tpu.memory_space<vmem>>, vector<1x8x32xbf16>
    %38 = vector.shape_cast %37 : vector<1x8x32xbf16> to vector<8x32xbf16>
    %39 = vector.shape_cast %36 : vector<8x32xbf16> to vector<1x8x32xbf16>
    tpu.vector_store %arg11[%c0_18, %c0_19, %c0_20], %39 {strides = array<i32>} : memref<1x8x32xbf16, #tpu.memory_space<vmem>>, vector<1x8x32xbf16>,
    %40 = vector.extract_strided_slice %29 {offsets = [0, 192], sizes = [8, 32], strides = [1, 1]} : vector<8x224xf32> to vector<8x32xf32>
    %41 = arith.truncf %40 : vector<8x32xf32> to vector<8x32xbf16>
    %c0_21 = arith.constant 0 : index
    %c0_22 = arith.constant 0 : index
    %c0_23 = arith.constant 0 : index
    %42 = vector.load %arg12[%c0_21, %c0_22, %c0_23] : memref<1x8x32xbf16, #tpu.memory_space<vmem>>, vector<1x8x32xbf16>
    %43 = vector.shape_cast %42 : vector<1x8x32xbf16> to vector<8x32xbf16>
    %44 = vector.shape_cast %41 : vector<8x32xbf16> to vector<1x8x32xbf16>
    tpu.vector_store %arg12[%c0_21, %c0_22, %c0_23], %44 {strides = array<i32>} : memref<1x8x32xbf16, #tpu.memory_space<vmem>>, vector<1x8x32xbf16>,
    %45 = vector.extract_strided_slice %29 {offsets = [0, 0], sizes = [8, 128], strides = [1, 1]} : vector<8x224xf32> to vector<8x128xf32>
    %cst_24 = arith.constant 5.000000e-01 : f32
    %46 = vector.broadcast %cst_24 : f32 to vector<8x128xf32>
    %47 = arith.mulf %46, %45 : vector<8x128xf32>
    %cst_25 = arith.constant 4.471500e-02 : f32
    %48 = vector.broadcast %cst_25 : f32 to vector<8x128xf32>
    %49 = arith.mulf %48, %45 : vector<8x128xf32>
    %50 = arith.mulf %49, %45 : vector<8x128xf32>
    %51 = arith.mulf %50, %45 : vector<8x128xf32>
    %52 = arith.addf %45, %51 : vector<8x128xf32>
    %cst_26 = arith.constant 0.797884583 : f32
    %53 = vector.broadcast %cst_26 : f32 to vector<8x128xf32>
    %54 = arith.mulf %53, %52 : vector<8x128xf32>
    %55 = math.tanh %54 : vector<8x128xf32>
    %cst_27 = arith.constant 1.000000e+00 : f32
    %56 = vector.broadcast %cst_27 : f32 to vector<8x128xf32>
    %57 = arith.addf %56, %55 : vector<8x128xf32>
    %58 = arith.mulf %47, %57 : vector<8x128xf32>
    %59 = arith.truncf %58 : vector<8x128xf32> to vector<8x128xbf16>
    %c0_28 = arith.constant 0 : index
    %c0_29 = arith.constant 0 : index
    %60 = vector.load %arg7[%c0_28, %c0_29] : memref<128x32xbf16, #tpu.memory_space<vmem>>, vector<128x32xbf16>
    %cst_30 = arith.constant dense<0.000000e+00> : vector<8x32xf32>
    %61 = tpu.matmul %59, %60, %cst_30 {dimension_numbers = #tpu.dot_dimension_numbers<[1], [0], [0], [1], [0, 0, 1, 1], [], []>} : vector<8x128xbf16>, vector<128x32xbf16>, vector<8x32xf32> -> vector<8x32xf32>
    %c0_31 = arith.constant 0 : index
    %c0_32 = arith.constant 0 : index
    %62 = vector.load %arg8[%c0_31, %c0_32] : memref<1x32xf32, #tpu.memory_space<vmem>>, vector<1x32xf32>
    %63 = vector.broadcast %62 : vector<1x32xf32> to vector<8x32xf32>
    %64 = arith.addf %61, %63 : vector<8x32xf32>
    %65 = arith.addf %1, %64 : vector<8x32xf32>
    %c0_33 = arith.constant 0 : index
    %c0_34 = arith.constant 0 : index
    %c0_35 = arith.constant 0 : index
    %66 = vector.load %arg9[%c0_33, %c0_34, %c0_35] : memref<1x8x32xf32, #tpu.memory_space<vmem>>, vector<1x8x32xf32>
    %67 = vector.shape_cast %66 : vector<1x8x32xf32> to vector<8x32xf32>
    %68 = vector.shape_cast %65 : vector<8x32xf32> to vector<1x8x32xf32>
    tpu.vector_store %arg9[%c0_33, %c0_34, %c0_35], %68 {strides = array<i32>} : memref<1x8x32xf32, #tpu.memory_space<vmem>>, vector<1x8x32xf32>,
    return
  }
  func.func @transform_0(%arg0: i32, %arg1: i32) -> (i32, i32, i32) {
    %c0_i32 = arith.constant 0 : i32
    %c0_i32_0 = arith.constant 0 : i32
    return %arg0, %arg1, %c0_i32 : i32, i32, i32
  }
  func.func @transform_1(%arg0: i32, %arg1: i32) -> (i32, i32) {
    %c0_i32 = arith.constant 0 : i32
    %c0_i32_0 = arith.constant 0 : i32
    %c0_i32_1 = arith.constant 0 : i32
    return %c0_i32, %c0_i32_0 : i32, i32
  }
  func.func @transform_2(%arg0: i32, %arg1: i32) -> (i32, i32) {
    %c0_i32 = arith.constant 0 : i32
    %c0_i32_0 = arith.constant 0 : i32
    %c0_i32_1 = arith.constant 0 : i32
    return %c0_i32, %c0_i32_0 : i32, i32
  }
  func.func @transform_3(%arg0: i32, %arg1: i32) -> (i32, i32) {
    %c0_i32 = arith.constant 0 : i32
    %c0_i32_0 = arith.constant 0 : i32
    %c0_i32_1 = arith.constant 0 : i32
    return %c0_i32, %c0_i32_0 : i32, i32
  }
  func.func @transform_4(%arg0: i32, %arg1: i32) -> (i32, i32) {
    %c0_i32 = arith.constant 0 : i32
    %c0_i32_0 = arith.constant 0 : i32
    %c0_i32_1 = arith.constant 0 : i32
    return %c0_i32, %c0_i32_0 : i32, i32
  }
  func.func @transform_5(%arg0: i32, %arg1: i32) -> (i32, i32) {
    %c0_i32 = arith.constant 0 : i32
    %c0_i32_0 = arith.constant 0 : i32
    %c0_i32_1 = arith.constant 0 : i32
    return %c0_i32, %c0_i32_0 : i32, i32
  }
  func.func @transform_6(%arg0: i32, %arg1: i32) -> (i32, i32) {
    %c0_i32 = arith.constant 0 : i32
    %c0_i32_0 = arith.constant 0 : i32
    %c0_i32_1 = arith.constant 0 : i32
    return %c0_i32, %c0_i32_0 : i32, i32
  }
  func.func @transform_7(%arg0: i32, %arg1: i32) -> (i32, i32, i32) {
    %c0_i32 = arith.constant 0 : i32
    %c0_i32_0 = arith.constant 0 : i32
    return %arg0, %arg1, %c0_i32 : i32, i32, i32
  }
  func.func @transform_8(%arg0: i32, %arg1: i32) -> (i32, i32, i32) {
    %c0_i32 = arith.constant 0 : i32
    %c0_i32_0 = arith.constant 0 : i32
    return %arg0, %arg1, %c0_i32 : i32, i32, i32
  }
  func.func @transform_9(%arg0: i32, %arg1: i32) -> (i32, i32, i32) {
    %c0_i32 = arith.constant 0 : i32
    %c0_i32_0 = arith.constant 0 : i32
    return %arg0, %arg1, %c0_i32 : i32, i32, i32
  }
  func.func @transform_10(%arg0: i32, %arg1: i32) -> (i32, i32, i32) {
    %c0_i32 = arith.constant 0 : i32
    %c0_i32_0 = arith.constant 0 : i32
    return %arg0, %arg1, %c0_i32 : i32, i32, i32
  }
}

</mosaic_0001>

<bundles_post_ra>
// kernel: tpu_custom_call.1
= control target key start
LH: loop header
LB: loop body
LE: loop exit
PB: predicated region body
PF: predicated region fallthrough
CT: control target
= control target key end

     0   :  { %s1582_s0 = inlined_call_operand.vmem [shape: f32[2,8,32], index: 0, kind: input, shape index: {}]   ;;  %s1583_s1 = inlined_call_operand.vmem [shape: f32[1,32], index: 1, kind: input, shape index: {}]   ;;  %s1584_s2 = inlined_call_operand.vmem [shape: f32[1,32], index: 2, kind: input, shape index: {}]   ;;  %s1585_s3 = inlined_call_operand.vmem [shape: bf16[32,224], index: 3, kind: input, shape index: {}]   ;;  %s1586_s4 = inlined_call_operand.vmem [shape: f32[1,224], index: 4, kind: input, shape index: {}]   ;;  %s1587_s5 = inlined_call_operand.vmem [shape: bf16[128,32], index: 5, kind: input, shape index: {}]   ;;  %s1588_s6 = inlined_call_operand.vmem [shape: f32[1,32], index: 6, kind: input, shape index: {}]   ;;  %s1589_s7 = inlined_call_operand.hbm [shape: f32[2,8,32], index: 7, kind: output, shape index: {0}]   ;;  %s1590_s8 = inlined_call_operand.hbm [shape: bf16[2,8,32], index: 8, kind: output, shape index: {1}]   ;;  %s1591_s9 = inlined_call_operand.hbm [shape: bf16[2,8,32], index: 9, kind: output, shape index: {2}]   ;;  %s1592_s10 = inlined_call_operand.hbm [shape: bf16[2,8,32], index: 10, kind: output, shape index: {3}]  }
   0x1   :  { %1595 = sst [smem:[#allocation12_spill]] %s1582_s0 }
   0x2   :  { %1596 = sst [smem:[#allocation13_spill]] %s1583_s1 }
   0x3   :  { %1597 = sst [smem:[#allocation14_spill]] %s1584_s2 }
   0x4   :  { %1598 = sst [smem:[#allocation15_spill]] %s1585_s3 }
   0x5   :  { %1599 = sst [smem:[#allocation16_spill]] %s1586_s4 }
   0x6   :  { %1600 = sst [smem:[#allocation17_spill]] %s1587_s5 }
   0x7   :  { %16 = vsyncpa [#allocation3], 0 }
   0x8   :  { %18 = vsyncpa [#allocation3 + $0x1], 0 }
   0x9   :  { %19 = vsyncpa [#allocation5], 0 }
   0xa   :  { %21 = vsyncpa [#allocation5 + $0x1], 0 }
   0xb   :  { %22 = vsyncpa [#allocation8], 0 }
   0xc   :  { %24 = vsyncpa [#allocation8 + $0x1], 0  ;;  %s1300_s13 = smov 0   ;;  %s1302_s14 = smov 0  }
   0xd   :  { %s1304_s15 = smov 0   ;;  %s1306_s16 = smov 0  }
   0xe   :  { %s1308_s17 = smov 0   ;;  %s1310_s18 = smov 0  }
   0xf LB: > { %s904_s19 = sadd.s32 4294967295, %s1234_s18   ;;  %s1593_s20 = sadd.s32 4294967294, %s1234_s18   ;;  %s1234_s18 = sphi %s1310_s18, %s30_s18   ;;  %s1230_s17 = sphi %s1308_s17, %s1617_s17   ;;  %s1226_s16 = sphi %s1306_s16, %s1616_s16   ;;  %s1222_s15 = sphi %s1304_s15, %s1615_s15   ;;  %s1218_s14 = sphi %s1302_s14, %s1614_s14   ;;  %s1214_s13 = sphi %s1300_s13, %s1613_s13  }
  0x10   : > { %s42_s21 = sadd.s32 1, %s1230_s17  ;;  %s205_s22 = sadd.s32 1, %s1222_s15 }
  0x11   : > { %p44_p0 = scmp.ge.s32.totalorder %s42_s21, 2  ;;  %p215_p1 = scmp.ne.s32.totalorder %s1222_s15, %s1218_s14 }
  0x12   : > { %p216_p2 = scmp.eq.s32.totalorder %s904_s19, 1  ;;  %p221_p3 = scmp.ne.s32.totalorder %s1218_s14, %s1214_s13 }
  0x13   : > { %s1619_s21 = smov (%p44_p0, %s42_s21), 0  ;;  %p222_p5 = scmp.eq.s32.totalorder %s1593_s20, 1 }
  0x14   : > { %p1342_p4 = por %p216_p2, %p215_p1  ;;  %s200_s24 = ssub.s32 %s1230_s17, %s1619_s21 }
  0x15   : > { %p908_p6 = scmp.ge.s32.totalorder %s1234_s18, 1  ;;  %p203_p7 = scmp.eq.s32.totalorder %s200_s24, 0 }
  0x16   : > { %p1351_p8 = por %p222_p5, %p221_p3  ;;  %p352_p9 = scmp.lt.s32.totalorder %s1234_s18, 3 }
  0x17   : > { %s1357_s26 = scalar_select %p203_p7, %s1222_s15, %s205_s22  }
  0x18   : > { %p353_p10 = pnand %p908_p6, %p352_p9 }
  0x19   : > { %p407_p11 = scmp.lt.s32.totalorder (!%p353_p10), %s1226_s16, 1  ;;  %vm416_vm0 = vcmask (!%p353_p10), 261120   ;;  %s1603_s0 = sld [smem:[#allocation12_spill]] (!%p353_p10)  ;;  %v1236_v11 = vmov (!%p353_p10), 0   ;;  %v1237_v13 = vmov (!%p353_p10), 0.0   ;;  %vm1238_vm1 = vmmov (!%p353_p10), 0  }
  0x1a   : > { %356 = sbr.rel (%p353_p10) target bundleno = 824 (0x338), region = 48  ;;  %s1604_s3 = sld [smem:[#allocation15_spill]] (!%p353_p10)  ;;  %519 = vmatprep.mubr.bf16.mxu0 (!%p353_p10), %v1236_v11  ;;  %951 = vmatprep.subr.bf16.mxu1 (!%p353_p10), %v1237_v13  ;;  %v454_v31 = vlaneseq (!%p353_p10)  ;;  %vm529_vm2 = vcmask (!%p353_p10), 257024  }
  0x1b   : > { %s1605_s5 = sld [smem:[#allocation17_spill]] (!%p353_p10)  ;;  %s1606_s1 = sld [smem:[#allocation13_spill]] (!%p353_p10)  ;;  %967 = vmatprep.mubr.msk.bf16.mxu1 (!%p353_p10), %vm1238_vm1, %v1237_v13 }
  0x1c   : > { %s1607_s2 = sld [smem:[#allocation14_spill]] (!%p353_p10)  ;;  %v455_v32 = vshrl.u32 (!%p353_p10), %v454_v31, 7  ;;  %s1608_s4 = sld [smem:[#allocation16_spill]] (!%p353_p10) }
  0x1d   : > { %s1417_s30 = sand.u32 (!%p353_p10), 1, %s1218_s14   ;;  %s1239_s12 = smov (!%p353_p10), 96  }
  0x1e   : > { %v456_v33 = vsub.s32 (!%p353_p10), 0, %v455_v32  ;;  %v460_v35 = vsub.s32 (!%p353_p10), 1, %v455_v32  ;;  %s1240_s24 = smov (!%p353_p10), 64   ;;  %s1241_s29 = smov (!%p353_p10), [#allocation4]  }
  0x20   : > { %v1046_v7 = vld [vmem:[%s1604_s3 + $0x4] ss:$8 sps:$4 sm:$0xff] (!%p353_p10)   ;;  %v1048_v8 = vld [vmem:[%s1604_s3] ss:$8 sps:$4 sm:$0xff] (!%p353_p10)   ;;  %v1049_v9 = vld [vmem:[%s1604_s3 + $0x14] ss:$8 sps:$4 sm:$0xff] (!%p353_p10)  }
  0x21   : > { %s408_s27 = scalar_select %p407_p11, %s1226_s16, 1  ;;  %487 = vmatprep.subr.bf16.mxu0 %v1046_v7  ;;  %v1051_v10 = vld [vmem:[%s1604_s3 + $0x10] ss:$8 sps:$4 sm:$0xff]   ;;  %v1052_v12 = vld [vmem:[%s1605_s5] sm:$0xff]   ;;  %v1053_v24 = vld [vmem:[%s1605_s5 + $0x8] sm:$0xff]  }
  0x22   : > { %488 = vmatpush1.bf16.msra.mxu0 %v1048_v8  ;;  %952 = vmatpush3.bf16.msra.mxu1 %v1052_v12  ;;  %v914_v18 = vld [vmem:[%s1606_s1] ss:$0 sm:$0xff]  ;;  %v1054_v25 = vld [vmem:[%s1605_s5 + $0x10] sm:$0xff]   ;;  %v1055_v26 = vld [vmem:[%s1605_s5 + $0x18] sm:$0xff]  }
  0x23   : > { %s913_s28 = sshll.u32 %s408_s27, 3  ;;  %489 = vmatprep.subr.bf16.mxu0 %v1049_v9  ;;  %953 = vmatprep.subr.bf16.mxu1 %v1237_v13  ;;  %v915_v20 = vld [vmem:[%s1607_s2] ss:$0 sm:$0xff]  ;;  %v1057_v28 = vld [vmem:[%s1605_s5 + $0x28] sm:$0xff]   ;;  %v1058_v29 = vld [vmem:[%s1605_s5 + $0x30] sm:$0xff]   ;;  %s1426_s27 = sand.u32 1, %s904_s19  }
  0x24   : > { %s413_s11 = scalar_lea.vmem %s1603_s0, %s913_s28  ;;  %v1056_v27 = vld [vmem:[%s1605_s5 + $0x20] sm:$0xff]   ;;  %v1059_v30 = vld [vmem:[%s1605_s5 + $0x38] sm:$0xff]   ;;  %s1429_s28 = sshll.u32 %s1226_s16, 6 }
  0x25   : > { %v1364_v0 = vld [vmem:[%s413_s11] sm:$0xff]  ;;  %s1420_s11 = sshll.u32 %s1417_s30, 2 }
  0x26   : > { %v417_v1 = vsel %vm416_vm0, %v1364_v0, 0.0  ;;  %490 = vmatpush1.bf16.msra.mxu0 %v1051_v10  ;;  %954 = vmatpush3.bf16.msra.mxu1 %v1053_v24  ;;  %v452_v34 = vld [vmem:[%s1608_s4] sm:$0x3]  ;;  %s392_s22 = scalar_lea.vmem [#allocation4], %s1420_s11  ;;  %s1594_s20 = scalar_lea.vmem [#allocation6], %s1420_s11 }
  0x27   : > { %418 = vadd.xlane.f32.xlu0 %v417_v1  ;;  %955 = vmatprep.subr.bf16.mxu1 %v1237_v13  ;;  %v457_v36 = vrot.slane %v452_v34, %v456_v33  ;;  %v461_v37 = vrot.slane %v452_v34, %v460_v35  ;;  %s1440_s0 = sshll.u32 %s1594_s20, 4  ;;  %s709_s1 = sshll.u32 %s392_s22, 4  ;;  %s1442_s1 = int_to_ptr.vmem [resolvable:$true] %s709_s1  ;;  %s1472_s0 = int_to_ptr.vmem [resolvable:$true] %s1440_s0 }
  0x28   : > { %s1064_s2 = scalar_lea.vmem %s1442_s1, 64 }
  0x29   : > { %p1065_p12 = scmp.ne.s32.totalorder %s1442_s1, %s1064_s2 }
  0x2a   : > { %956 = vmatpush3.bf16.msra.mxu1 %v1054_v25 }
  0x2b   : > { %957 = vmatprep.subr.bf16.mxu1 %v1237_v13  ;;  %p1066_p13 = pnand %p1065_p12, %p1342_p4 }
  0x2d   : > { %p1067_p0 = pneg %p1066_p13 }
  0x2e   : > { %958 = vmatpush3.bf16.msra.mxu1 %v1055_v26 }
  0x2f   : > { %959 = vmatprep.subr.bf16.mxu1 %v1237_v13 }
  0x32   : > { %960 = vmatpush3.bf16.msra.mxu1 %v1056_v27 }
  0x33   : > { %961 = vmatprep.subr.bf16.mxu1 %v1237_v13 }
  0x36   : > { %962 = vmatpush3.bf16.msra.mxu1 %v1057_v28 }
  0x37   : > { %963 = vmatprep.subr.bf16.mxu1 %v1237_v13 }
  0x3a   : > { %964 = vmatpush3.bf16.msra.mxu1 %v1058_v29 }
  0x3b   : > { %965 = vmatprep.subr.bf16.mxu1 %v1237_v13 }
  0x3e   : > { %966 = vmatpush3.bf16.msra.mxu1 %v1059_v30 }
  0xb4   : > { %v419_v2 = vpop.xlane.xlu0 %418 }
  0xb5   : > { %v421_v3 = vmul.f32 0.03125, %v419_v2 }
  0xb7   : > { %v422_v4 = vsub.f32 %v1364_v0, %v421_v3 }
  0xb9   : > { %v423_v5 = vmul.f32 %v422_v4, %v422_v4 }
  0xbb   : > { %v424_v6 = vsel %vm416_vm0, %v423_v5, 0.0 }
  0xbc   : > { %425 = vadd.xlane.f32.xlu0 %v424_v6 }
 0x149   : > { %v426_v14 = vpop.xlane.xlu0 %425 }
 0x14a   : > { %v427_v15 = vmul.f32 0.03125, %v426_v14 }
 0x14c   : > { %v428_v16 = vadd.f32 1e-05, %v427_v15 }
 0x14e   : > { %1060 = vrsqrt.f32 %v428_v16 }
 0x158   : > { %v1061_v17 = vpop.eup %1060 }
 0x159   : > { %v430_v19 = vmul.f32 %v1061_v17, %v422_v4 }
 0x15b   : > { %v438_v21 = vmul.f32 %v914_v18, %v430_v19 }
 0x15d   : > { %v446_v22 = vadd.f32 %v915_v20, %v438_v21 }
 0x15f   : > { %v447_v23 = vpack.c.bf16 %v446_v22, %v446_v22 }
 0x161   : > { %920 = vmatmul.mubr.msk.bf16.vlgmr.msra.gmra.mrb[0].mxu0 %vm416_vm0, %v447_v23 }
 0x234   : > { %v521_v38 = vpop.f32.mrb[0].mxu0 }
 0x235   : > { %v522_v39 = vadd.f32 %v521_v38, %v457_v36  ;;  %v523_v40 = vpop.f32.mrb[1].mxu0 }
 0x236   : > { %v524_v41 = vadd.f32 %v523_v40, %v461_v37  ;;  %v525_v42 = vpop.f32.mrb[2].mxu0 }
 0x237   : > { %v543_v43 = vmul.f32 0.044715, %v522_v39  ;;  %v526_v44 = vpop.f32.mrb[3].mxu0  ;;  %v542_v51 = vmul.f32 0.5, %v522_v39 }
 0x238   : > { %v528_v45 = vpack.c.bf16 %v524_v41, %v524_v41 }
 0x239   : > { %v544_v46 = vmul.f32 %v543_v43, %v522_v39 }
 0x23a   : > { %534 = vrot.lane.b32.xlu1 %v528_v45, %s1239_s12  ;;  %530 = vst.msk [vmem:[%s392_s22] sm:$0xf] %vm529_vm2, %v528_v45  ;;  %s1068_s12 = sshll.u32 %s1241_s29, 4  ;;  %s1069_s12 = int_to_ptr.vmem [resolvable:$false] %s1068_s12 }
 0x23b   : > { %v545_v47 = vmul.f32 %v544_v46, %v522_v39  ;;  %s1070_s3 = scalar_lea.vmem %s1069_s12, 128  ;;  %p1071_p1 = scmp.lt.s32.totalorder %s1442_s1, %s1069_s12 }
 0x23c   : > { %p1072_p2 = scmp.lt.s32.totalorder %s1070_s3, %s1064_s2 }
 0x23d   : > { %v546_v48 = vadd.f32 %v545_v47, %v522_v39 }
 0x23e   : > { %538 = vrot.lane.b32.xlu1 %v528_v45, %s1240_s24  ;;  %s1435_s24 = scalar_lea.hbm %s1590_s8, %s1429_s28  ;;  %p1073_p3 = por %p1072_p2, %p1071_p1 }
 0x23f   : > { %v547_v49 = vmul.f32 0.7978846, %v546_v48 }
 0x240   : > { %p1074_p5 = pnand %p1073_p3, %p1067_p0 }
 0x241   : > { %1062 = vtanh.f32 %v547_v49 }
 0x24b   : > { %v1063_v50 = vpop.eup %1062 }
 0x24c   : > { %v549_v52 = vadd.f32 1.0, %v1063_v50 }
 0x24e   : > { %v550_v53 = vmul.f32 %v549_v52, %v542_v51 }
 0x250   : > { %v551_v54 = vpack.c.bf16 %v550_v53, %v550_v53 }
 0x252   : > { %968 = vmatmul.mubr.bf16.vlgmr.msra.gmra.mrb[0].mxu1 %v551_v54 }
 0x2ac   : > { %v535_v55 = vpop.permute.xlu1 %534 }
 0x2ad   : > { %1077 = shalt.err (!%p1074_p5)
}
 0x2ae   : > { %s1078_s22 = scalar_lea.hbm %s1435_s24, 64  ;;  %s1082_s29 = scalar_lea.hbm %s1590_s8, 128 }
 0x2af   : > { %p1079_p6 = scmp.ne.s32.totalorder %s1435_s24, %s1078_s22  ;;  %p1083_p10 = scmp.lt.u32.totalorder %s1435_s24, %s1590_s8 }
 0x2b0   : > { %p1084_p11 = scmp.lt.u32.totalorder %s1082_s29, %s1078_s22  ;;  %p1086_p13 = scmp.lt.u32.totalorder %s1078_s22, %s1435_s24 }
 0x2b1   : > { %p1080_p7 = pnand %p1079_p6, %p1342_p4 }
 0x2b2   : > { %p1085_p12 = por %p1084_p11, %p1083_p10 }
 0x2b3   : > { %p1081_p9 = pneg %p1080_p7 }
 0x2b4   : > { %p1087_p0 = por %p1086_p13, %p1085_p12 }
 0x2b6   : > { %p1088_p1 = pnand %p1087_p0, %p1081_p9 }
 0x2b8   : > { %1091 = shalt.err (!%p1088_p1)
}
 0x2b9   : > { %s1609_s2 = scalar_lea.sflag [#allocation5], %s1426_s27  ;;  %s1610_s3 = scalar_lea.vmem [#allocation6], %s1420_s11  ;;  %v539_v56 = vpop.permute.xlu1 %538 }
 0x2ba   : > { %972 = dma.vmem_to_hbm [thread:$0]  (%p1342_p4), %s1442_s1, 64, %s1435_s24, %s1609_s2   ;;  %537 = vst.msk [vmem:[%s1610_s3] sm:$0xf] %vm529_vm2, %v535_v55 }
 0x2bb   : > { %s721_s19 = scalar_lea.hbm %s1591_s9, %s1429_s28  ;;  %s1092_s22 = scalar_lea.vmem %s1472_s0, 64 }
 0x2bc   : > { %p1093_p2 = scmp.ne.s32.totalorder %s1472_s0, %s1092_s22  ;;  %s1242_s29 = smov [#allocation6]  }
 0x2bd   : > { %s1096_s1 = sshll.u32 %s1242_s29, 4  ;;  %s1097_s1 = int_to_ptr.vmem [resolvable:$false] %s1096_s1 }
 0x2be   : > { %p1094_p3 = pnand %p1093_p2, %p1342_p4  ;;  %s1098_s24 = scalar_lea.vmem %s1097_s1, 128 }
 0x2bf   : > { %p1099_p6 = scmp.lt.s32.totalorder %s1472_s0, %s1097_s1  ;;  %p1100_p7 = scmp.lt.s32.totalorder %s1098_s24, %s1092_s22 }
 0x2c0   : > { %p1095_p5 = pneg %p1094_p3 }
 0x2c1   : > { %p1101_p9 = por %p1100_p7, %p1099_p6 }
 0x2c3   : > { %p1102_p10 = pnand %p1101_p9, %p1095_p5 }
 0x2c5   : > { %1105 = shalt.err (!%p1102_p10)
}
 0x2c6   : > { %s1106_s12 = scalar_lea.hbm %s721_s19, 64  ;;  %s1110_s4 = scalar_lea.hbm %s1591_s9, 128 }
 0x2c7   : > { %p1107_p11 = scmp.ne.s32.totalorder %s721_s19, %s1106_s12  ;;  %p1111_p0 = scmp.lt.u32.totalorder %s721_s19, %s1591_s9 }
 0x2c8   : > { %p1112_p1 = scmp.lt.u32.totalorder %s1110_s4, %s1106_s12  ;;  %p1114_p3 = scmp.lt.u32.totalorder %s1106_s12, %s721_s19 }
 0x2c9   : > { %p1108_p12 = pnand %p1107_p11, %p1342_p4 }
 0x2ca   : > { %p1113_p2 = por %p1112_p1, %p1111_p0 }
 0x2cb   : > { %p1109_p13 = pneg %p1108_p12 }
 0x2cc   : > { %p1115_p6 = por %p1114_p3, %p1113_p2 }
 0x2ce   : > { %p1116_p5 = pnand %p1115_p6, %p1109_p13 }
 0x2d0   : > { %1119 = shalt.err (!%p1116_p5)
}
 0x2d1   : > { %s1611_s22 = scalar_lea.sflag [#allocation5], %s1426_s27  ;;  %s406_s29 = scalar_lea.vmem [#allocation7], %s1420_s11 }
 0x2d2   : > { %973 = dma.vmem_to_hbm [thread:$0]  (%p1342_p4), %s1472_s0, 64, %s721_s19, %s1611_s22   ;;  %541 = vst.msk [vmem:[%s406_s29] sm:$0xf] %vm529_vm2, %v539_v56 }
 0x2d3   : > { %s1502_s24 = scalar_lea.hbm %s1592_s10, %s1429_s28  ;;  %s737_s12 = sshll.u32 %s406_s29, 4  ;;  %s738_s12 = int_to_ptr.vmem [resolvable:$true] %s737_s12 }
 0x2d4   : > { %s681_s2 = scalar_lea.sflag [#allocation8], %s1417_s30  ;;  %s1120_s3 = scalar_lea.vmem %s738_s12, 64 }
 0x2d5   : > { %p1121_p7 = scmp.ne.s32.totalorder %s738_s12, %s1120_s3  ;;  %s1243_s27 = smov [#allocation7]  }
 0x2d6   : > { %s1124_s4 = sshll.u32 %s1243_s27, 4  ;;  %s1125_s4 = int_to_ptr.vmem [resolvable:$false] %s1124_s4 }
 0x2d7   : > { %p1122_p9 = pnand %p1121_p7, %p1342_p4  ;;  %s1126_s0 = scalar_lea.vmem %s1125_s4, 128 }
 0x2d8   : > { %p1127_p11 = scmp.lt.s32.totalorder %s738_s12, %s1125_s4  ;;  %p1128_p12 = scmp.lt.s32.totalorder %s1126_s0, %s1120_s3 }
 0x2d9   : > { %p1123_p10 = pneg %p1122_p9 }
 0x2da   : > { %p1129_p13 = por %p1128_p12, %p1127_p11 }
 0x2dc   : > { %p1130_p0 = pnand %p1129_p13, %p1123_p10 }
 0x2de   : > { %1133 = shalt.err (!%p1130_p0)
}
 0x2df   : > { %s1134_s11 = scalar_lea.hbm %s1502_s24, 64  ;;  %s1138_s20 = scalar_lea.hbm %s1592_s10, 128 }
 0x2e0   : > { %p1135_p1 = scmp.ne.s32.totalorder %s1502_s24, %s1134_s11  ;;  %p1139_p6 = scmp.lt.u32.totalorder %s1502_s24, %s1592_s10 }
 0x2e1   : > { %p1140_p5 = scmp.lt.u32.totalorder %s1138_s20, %s1134_s11  ;;  %p1142_p9 = scmp.lt.u32.totalorder %s1134_s11, %s1502_s24 }
 0x2e2   : > { %p1136_p2 = pnand %p1135_p1, %p1342_p4 }
 0x2e3   : > { %p1141_p7 = por %p1140_p5, %p1139_p6 }
 0x2e4   : > { %p1137_p3 = pneg %p1136_p2 }
 0x2e5   : > { %p1143_p10 = por %p1142_p9, %p1141_p7 }
 0x2e7   : > { %p1144_p11 = pnand %p1143_p10, %p1137_p3 }
 0x2e9   : > { %1147 = shalt.err (!%p1144_p11)
}
 0x2ea   : > { %974 = dma.vmem_to_hbm [thread:$0]  (%p1342_p4), %s738_s12, 64, %s1502_s24, %s681_s2   ;;  %v922_v57 = vld [vmem:[%s1588_s6] ss:$0 sm:$0xff] }
 0x2eb   : > { %s909_s5 = sshll.u32 %s1417_s30, 3  ;;  %s935_s27 = sshll.u32 %s1226_s16, 7 }
 0x2ec   : > { %s385_s4 = scalar_lea.vmem [#allocation2], %s909_s5  ;;  %s1531_s24 = scalar_lea.hbm %s1589_s7, %s935_s27 }
 0x2ed   : > { %s695_s0 = sshll.u32 %s385_s4, 4  ;;  %s666_s16 = scalar_lea.sflag [#allocation3], %s1417_s30  ;;  %s1533_s0 = int_to_ptr.vmem [resolvable:$true] %s695_s0 }
 0x2ee   : > { %s1148_s12 = scalar_lea.vmem %s1533_s0, 128  ;;  %s1244_s2 = smov [#allocation2]  }
 0x2ef   : > { %p1149_p12 = scmp.ne.s32.totalorder %s1533_s0, %s1148_s12  ;;  %s1152_s19 = sshll.u32 %s1244_s2, 4  ;;  %s1153_s19 = int_to_ptr.vmem [resolvable:$false] %s1152_s19 }
 0x2f0   : > { %s1154_s20 = scalar_lea.vmem %s1153_s19, 256  ;;  %p1155_p1 = scmp.lt.s32.totalorder %s1533_s0, %s1153_s19 }
 0x2f1   : > { %p1150_p13 = pnand %p1149_p12, %p1342_p4  ;;  %p1156_p2 = scmp.lt.s32.totalorder %s1154_s20, %s1148_s12 }
 0x2f3   : > { %p1151_p0 = pneg %p1150_p13  ;;  %p1157_p3 = por %p1156_p2, %p1155_p1 }
 0x2f5   : > { %p1158_p6 = pnand %p1157_p3, %p1151_p0 }
 0x325   : > { %v657_v58 = vpop.f32.mrb[0].mxu1 }
 0x326   : > { %v658_v59 = vadd.f32 %v922_v57, %v657_v58  ;;  %v969_v60 = vpop.f32.mrb[1].mxu1 }
 0x327   : > { %v660_v61 = vpop.f32.mrb[2].mxu1 }
 0x328   : > { %v663_v62 = vadd.f32 %v658_v59, %v1364_v0  ;;  %v970_v63 = vpop.f32.mrb[3].mxu1 }
 0x32a   : > { %664 = vst.msk [vmem:[%s385_s4] sm:$0xff] %vm416_vm0, %v663_v62 }
 0x32b   : > { %1161 = shalt.err (!%p1158_p6)
}
 0x32c   : > { %s1162_s30 = scalar_lea.hbm %s1531_s24, 128  ;;  %s1166_s5 = scalar_lea.hbm %s1589_s7, 256 }
 0x32d   : > { %p1163_p5 = scmp.ne.s32.totalorder %s1531_s24, %s1162_s30  ;;  %p1167_p10 = scmp.lt.u32.totalorder %s1531_s24, %s1589_s7 }
 0x32e   : > { %p1168_p11 = scmp.lt.u32.totalorder %s1166_s5, %s1162_s30  ;;  %p1170_p13 = scmp.lt.u32.totalorder %s1162_s30, %s1531_s24 }
 0x32f   : > { %p1164_p7 = pnand %p1163_p5, %p1342_p4 }
 0x330   : > { %p1169_p12 = por %p1168_p11, %p1167_p10 }
 0x331   : > { %p1165_p9 = pneg %p1164_p7 }
 0x332   : > { %p1171_p0 = por %p1170_p13, %p1169_p12 }
 0x334   : > { %p1172_p1 = pnand %p1171_p0, %p1165_p9 }
 0x336   : > { %1175 = shalt.err (!%p1172_p1)
}
 0x337   : > { %971 = dma.vmem_to_hbm [thread:$0]  (%p1342_p4), %s1533_s0, 128, %s1531_s24, %s666_s16  }
 0x338 PF: > { %p992_p2 = scmp.ge.s32.totalorder %s1234_s18, 2  ;;  %s749_s27 = sand.u32 1, %s1214_s13  }
 0x339   : > { %s750_s4 = scalar_lea.sflag [#allocation3], %s749_s27 }
 0x33a   : > { %p980_p3 = pnand %p992_p2, %p1351_p8 }
 0x33c   : > { %1201 = dma.done.wait (!%p980_p3), %s750_s4, 128  }
 0x33d   : > { %1203 = vsyncadd (!%p980_p3), %s750_s4, 4294967168  ;;  %s1612_s11 = sadd.s32 4294967294, %s1234_s18  }
 0x33e   : > { %s758_s28 = sand.u32 1, %s1612_s11  }
 0x33f   : > { %s759_s12 = scalar_lea.sflag [#allocation5], %s758_s28 }
 0x340   : > { %1205 = dma.done.wait (!%p980_p3), %s759_s12, 128  }
 0x341   : > { %1207 = vsyncadd (!%p980_p3), %s759_s12, 4294967168  ;;  %s777_s23 = scalar_lea.sflag [#allocation8], %s749_s27 }
 0x342   : > { %1209 = dma.done.wait (!%p980_p3), %s777_s23, 64  }
 0x343   : > { %1211 = vsyncadd (!%p980_p3), %s777_s23, 4294967232  ;;  %s30_s18 = sadd.s32 1, %s1234_s18   ;;  %s1613_s13 = smov %s1218_s14 }
 0x344   : > { %p27_p4 = scmp.ge.s32.totalorder %s30_s18, 4   ;;  %s1614_s14 = smov %s1222_s15 }
 0x345   : > { %s1615_s15 = smov %s1357_s26  ;;  %s1616_s16 = smov %s1230_s17 }
 0x346   : > { %s1617_s17 = smov %s1619_s21  ;;  %29 = sbr.rel (!%p27_p4) target bundleno = 15 (0xf), region = 132 }
 0x34d   :  { %782 = vsyncpa [#allocation3], 1 }
 0x34e   :  { %784 = vsyncpa [#allocation3 + $0x1], 1 }
 0x34f   :  { %785 = vsyncpa [#allocation5], 1 }
 0x350   :  { %787 = vsyncpa [#allocation5 + $0x1], 1 }
 0x351   :  { %788 = vsyncpa [#allocation8], 1 }
 0x352   :  { %790 = vsyncpa [#allocation8 + $0x1], 1 }

</bundles_post_ra>
